<compile_context>
chip_gen: v6e
topology: v6e:2x2x1
jax: 0.10.0
libtpu: 0.0.40
codegen_flags: <defaults>
</compile_context>

<pallas_src>
import jax
import jax.numpy as jnp
from jax.experimental import pallas as pl
from jax.experimental.pallas import tpu as pltpu


def _round_up(x, m):
    return ((x + m - 1) // m) * m


def _tile_units(total_units, max_units):
    """Largest d <= max_units that divides total_units (both in units of 128)."""
    d = max(1, min(total_units, max_units))
    while total_units % d:
        d -= 1
    return d


def _conv_stats_kernel(p_ref, w_ref, yt_ref, ps_ref, acc_ref):
    """K-tiled MXU matmul with an f32 VMEM accumulator. On the last K step, emit the tile
    transposed to channel-major bf16 plus per-tile channel sum / sum-of-squares."""
    k = pl.program_id(1)

    @pl.when(k == 0)
    def _():
        acc_ref[...] = jnp.zeros_like(acc_ref)

    acc_ref[...] += jnp.dot(p_ref[...], w_ref[...],
                            preferred_element_type=jnp.float32)

    @pl.when(k == pl.num_programs(1) - 1)
    def _():
        acc = acc_ref[...]                                   # (tm, C_pad) f32
        s = jnp.sum(acc, axis=0, keepdims=True)              # (1, C_pad) channel sum
        ss = jnp.sum(acc * acc, axis=0, keepdims=True)       # (1, C_pad) channel sum-of-squares
        rows = jax.lax.broadcasted_iota(jnp.int32, (8, acc.shape[1]), 0)
        # row 0 = sum, row 1 = sum of squares, rows 2..7 = 0 (keeps an (8,128)-aligned tile)
        ps_ref[...] = jnp.where(rows == 0, s, jnp.where(rows == 1, ss, 0.0))
        yt_ref[...] = acc.T.astype(yt_ref.dtype)             # (C_pad, tm) bf16, channel-major


def _bn_relu_kernel(y_ref, scale_ref, shift_ref, o_ref):
    """Streamed y*scale + shift -> ReLU on one (C_pad, tm_bn) channel-major tile."""
    y = y_ref[...].astype(jnp.float32)                       # (C_pad, tm_bn)
    o_ref[...] = jnp.maximum(y * scale_ref[...] + shift_ref[...], 0.0).astype(o_ref.dtype)


def conv_block_forward(x, params, *, stride=1, padding=0, eps=1e-5,
                       tm=512, tm_bn=2048, tk=512):
    w, gamma, beta = params["w"], params["gamma"], params["beta"]
    # NOTE: params["b"] (conv bias) is intentionally unused — BatchNorm's batch-mean
    # subtraction cancels any per-channel constant exactly (verified vs. reference).
    N, C_in, H, W = x.shape
    C_out, _, KH, KW = w.shape

    Hp, Wp = H + 2 * padding, W + 2 * padding
    OH = (Hp - KH) // stride + 1
    OW = (Wp - KW) // stride + 1
    SP = OH * OW                                  # spatial positions per image
    K = C_in * KH * KW
    M_true = N * SP                               # true element count per channel for BN stats

    # ---- tiling: 128-multiples that divide the padded extents (bounded padding waste) ----
    sp_units = _round_up(SP, 128) // 128
    tm_bn = 128 * _tile_units(sp_units, max(1, tm_bn // 128))
    tm = 128 * _tile_units(tm_bn // 128, max(1, tm // 128))
    spatial_pad = 128 * sp_units                  # per-image padded spatial extent
    M_pad = N * spatial_pad

    k_units = _round_up(K, 128) // 128
    tk = 128 * _tile_units(k_units, max(1, tk // 128))
    K_pad = 128 * k_units

    C_pad = _round_up(C_out, 128)                 # lane-dense output channels

    # ---- glue: spatial zero-pad + im2col, done once in XLA, in bf16 ----
    # TODO(synk): fuse im2col into kernel 1 (tap accumulation with halo DMAs) to avoid the
    # KH*KW-inflated patches array in HBM at large shapes.
    xb = x.astype(jnp.bfloat16)
    xp = jnp.pad(xb, ((0, 0), (0, 0), (padding, padding), (padding, padding)))
    cols = []
    for i in range(KH):
        for j in range(KW):
            cols.append(xp[:, :, i:i + stride * OH:stride, j:j + stride * OW:stride])
    patches = jnp.stack(cols, axis=2)                          # (N, C_in, KH*KW, OH, OW)
    patches = patches.reshape(N, K, SP).transpose(0, 2, 1)     # (N, SP, K)
    patches = jnp.pad(patches, ((0, 0), (0, spatial_pad - SP), (0, K_pad - K)))
    patches = patches.reshape(M_pad, K_pad)                    # bf16, zero rows/cols padded

    w2d = jnp.pad(w.reshape(C_out, K).T, ((0, K_pad - K), (0, C_pad - C_out)))
    w2d = w2d.astype(jnp.bfloat16)                             # (K_pad, C_pad)

    g1 = M_pad // tm
    gk = K_pad // tk

    # ---- kernel 1: K-tiled conv matmul + fused per-tile BN statistics ----
    y_t, partial_stats = pl.pallas_call(
        _conv_stats_kernel,
        grid=(g1, gk),
        in_specs=[
            pl.BlockSpec((tm, tk), lambda i, k: (i, k)),
            pl.BlockSpec((tk, C_pad), lambda i, k: (k, 0)),
        ],
        out_specs=[
            pl.BlockSpec((C_pad, tm), lambda i, k: (0, i)),
            pl.BlockSpec((8, C_pad), lambda i, k: (i, 0)),
        ],
        out_shape=[
            jax.ShapeDtypeStruct((C_pad, M_pad), jnp.bfloat16),
            jax.ShapeDtypeStruct((g1 * 8, C_pad), jnp.float32),
        ],
        scratch_shapes=[pltpu.VMEM((tm, C_pad), jnp.float32)],
        compiler_params=pltpu.CompilerParams(
            dimension_semantics=("parallel", "arbitrary")),
    )(patches, w2d)

    # ---- tiny XLA step: reduce partial stats, fold gamma/beta into per-channel scale/shift ----
    stats = partial_stats.reshape(g1, 8, C_pad).sum(axis=0)    # (8, C_pad)
    mean = stats[0] / M_true
    var = jnp.maximum(stats[1] / M_true - mean * mean, 0.0)    # biased batch variance
    gamma_p = jnp.pad(gamma, (0, C_pad - C_out))               # padded lanes get scale 0
    beta_p = jnp.pad(beta, (0, C_pad - C_out))
    inv_std = jax.lax.rsqrt(var + eps)
    scale = (gamma_p * inv_std).reshape(C_pad, 1).astype(jnp.float32)
    shift = (beta_p - mean * gamma_p * inv_std).reshape(C_pad, 1).astype(jnp.float32)

    spbn = spatial_pad // tm_bn

    # ---- kernel 2: streamed normalize + ReLU, writing NCHW-ordered blocks directly ----
    out3d = pl.pallas_call(
        _bn_relu_kernel,
        grid=(M_pad // tm_bn,),
        in_specs=[
            pl.BlockSpec((C_pad, tm_bn), lambda g: (0, g)),
            pl.BlockSpec((C_pad, 1), lambda g: (0, 0)),
            pl.BlockSpec((C_pad, 1), lambda g: (0, 0)),
        ],
        out_specs=pl.BlockSpec((pl.Squeezed(), C_pad, tm_bn),
                               lambda g: (g // spbn, 0, g % spbn)),
        out_shape=jax.ShapeDtypeStruct((N, C_pad, spatial_pad), jnp.float32),
        compiler_params=pltpu.CompilerParams(dimension_semantics=("parallel",)),
    )(y_t, scale, shift)

    # drop channel / spatial padding; output is already channel-major (no NCHW transpose pass)
    return out3d[:, :C_out, :SP].reshape(N, C_out, OH, OW)


def _reference(x, params, *, stride, padding, eps=1e-5):
    w, b, gamma, beta = params["w"], params["b"], params["gamma"], params["beta"]
    C_out = w.shape[0]
    y = jax.lax.conv_general_dilated(
        x, w, window_strides=(stride, stride),
        padding=[(padding, padding), (padding, padding)],
        dimension_numbers=("NCHW", "OIHW", "NCHW"),
    ) + b.reshape(1, C_out, 1, 1)
    mean = y.mean(axis=(0, 2, 3), keepdims=True)
    var = ((y - mean) ** 2).mean(axis=(0, 2, 3), keepdims=True)
    yhat = (y - mean) / jnp.sqrt(var + eps)
    return jnp.maximum(yhat * gamma.reshape(1, -1, 1, 1) + beta.reshape(1, -1, 1, 1), 0.0)


if __name__ == "__main__":
    key = jax.random.PRNGKey(0)
    kx, kw, kb, kg, kbe = jax.random.split(key, 5)

    # small shapes consistent with the module
    N, C_in, H, W = 2, 4, 16, 16
    C_out, KH, KW = 8, 3, 3
    stride, padding = 1, 1

    x = jax.random.normal(kx, (N, C_in, H, W), jnp.float32)

    # deterministic parameter init (shapes from ConvBlock.__init__ / lazy conv)
    fan_in = C_in * KH * KW
    bound = 1.0 / (fan_in ** 0.5)
    w = jax.random.uniform(kw, (C_out, C_in, KH, KW), jnp.float32, -bound, bound)
    b = jax.random.uniform(kb, (C_out,), jnp.float32, -bound, bound)
    gamma = jnp.ones((C_out,), jnp.float32) + 0.1 * jax.random.normal(kg, (C_out,), jnp.float32)
    beta = 0.1 * jax.random.normal(kbe, (C_out,), jnp.float32)
    params = dict(w=w, b=b, gamma=gamma, beta=beta)

    out = conv_block_forward(x, params, stride=stride, padding=padding)
    out = jax.block_until_ready(out)

    assert out.shape == (N, C_out, H, W), out.shape
    ref = _reference(x, params, stride=stride, padding=padding)
    max_err = float(jnp.max(jnp.abs(out - ref)))
    # bf16 matmul operands + bf16 intermediate vs. a pure-f32 reference: expect ~1e-2-level
    # absolute error on O(1)-magnitude normalized outputs (f32 MXU accumulation throughout).
    assert max_err < 6e-2, f"max abs error {max_err}"
    print("KERNEL_OK")
</pallas_src>

<mosaic_0001>
module attributes {stable_mosaic.version = 11 : i64} {
  func.func @_conv_stats_kernel(%arg0: i32, %arg1: i32, %arg2: memref<256x128xbf16, #tpu.memory_space<vmem>>, %arg3: memref<128x128xbf16, #tpu.memory_space<vmem>>, %arg4: memref<128x256xbf16, #tpu.memory_space<vmem>>, %arg5: memref<8x128xf32, #tpu.memory_space<vmem>>, %arg6: memref<256x128xf32, #tpu.memory_space<vmem>>) attributes {dimension_semantics = [#tpu.dimension_semantics<parallel>, #tpu.dimension_semantics<arbitrary>], iteration_bounds = array<i64: 2, 1>, scalar_prefetch = 0 : i64, scratch_operands = 1 : i64, tpu.core_type = #tpu.core_type<tc>, window_params = [{transform_indices = @transform_0, window_bounds = array<i64: 256, 128>}, {transform_indices = @transform_1, window_bounds = array<i64: 128, 128>}, {transform_indices = @transform_2, window_bounds = array<i64: 128, 256>}, {transform_indices = @transform_3, window_bounds = array<i64: 8, 128>}]} {
    %c0_i32 = arith.constant 0 : i32
    %0 = arith.cmpi eq, %arg1, %c0_i32 : i32
    %1 = arith.extui %0 : i1 to i32
    %c0_i32_0 = arith.constant 0 : i32
    %2 = arith.cmpi ne, %1, %c0_i32_0 : i32
    scf.if %2 {
      %cst_10 = arith.constant 0.000000e+00 : f32
      %12 = vector.broadcast %cst_10 : f32 to vector<256x128xf32>
      %c0_11 = arith.constant 0 : index
      %c0_12 = arith.constant 0 : index
      %13 = vector.load %arg6[%c0_11, %c0_12] : memref<256x128xf32, #tpu.memory_space<vmem>>, vector<256x128xf32>
      tpu.vector_store %arg6[%c0_11, %c0_12], %12 {strides = array<i32>} : memref<256x128xf32, #tpu.memory_space<vmem>>, vector<256x128xf32>,
    } else {
    }
    %c0 = arith.constant 0 : index
    %c0_1 = arith.constant 0 : index
    %3 = vector.load %arg6[%c0, %c0_1] : memref<256x128xf32, #tpu.memory_space<vmem>>, vector<256x128xf32>
    %c0_2 = arith.constant 0 : index
    %c0_3 = arith.constant 0 : index
    %4 = vector.load %arg2[%c0_2, %c0_3] : memref<256x128xbf16, #tpu.memory_space<vmem>>, vector<256x128xbf16>
    %c0_4 = arith.constant 0 : index
    %c0_5 = arith.constant 0 : index
    %5 = vector.load %arg3[%c0_4, %c0_5] : memref<128x128xbf16, #tpu.memory_space<vmem>>, vector<128x128xbf16>
    %cst = arith.constant dense<0.000000e+00> : vector<256x128xf32>
    %6 = tpu.matmul %4, %5, %cst {dimension_numbers = #tpu.dot_dimension_numbers<[1], [0], [0], [1], [0, 0, 1, 1], [], []>} : vector<256x128xbf16>, vector<128x128xbf16>, vector<256x128xf32> -> vector<256x128xf32>
    %7 = arith.addf %3, %6 : vector<256x128xf32>
    %c0_6 = arith.constant 0 : index
    %c0_7 = arith.constant 0 : index
    %8 = vector.load %arg6[%c0_6, %c0_7] : memref<256x128xf32, #tpu.memory_space<vmem>>, vector<256x128xf32>
    tpu.vector_store %arg6[%c0_6, %c0_7], %7 {strides = array<i32>} : memref<256x128xf32, #tpu.memory_space<vmem>>, vector<256x128xf32>,
    %c0_i32_8 = arith.constant 0 : i32
    %9 = arith.cmpi eq, %arg1, %c0_i32_8 : i32
    %10 = arith.extui %9 : i1 to i32
    %c0_i32_9 = arith.constant 0 : i32
    %11 = arith.cmpi ne, %10, %c0_i32_9 : i32
    scf.if %11 {
      %c0_10 = arith.constant 0 : index
      %c0_11 = arith.constant 0 : index
      %12 = vector.load %arg6[%c0_10, %c0_11] : memref<256x128xf32, #tpu.memory_space<vmem>>, vector<256x128xf32>
      %cst_12 = arith.constant dense<0.000000e+00> : vector<128xf32>
      %13 = vector.multi_reduction <add>, %12, %cst_12 [0] : vector<256x128xf32> to vector<128xf32>
      %14 = vector.shape_cast %13 : vector<128xf32> to vector<1x128xf32>
      %15 = arith.mulf %12, %12 : vector<256x128xf32>
      %cst_13 = arith.constant dense<0.000000e+00> : vector<128xf32>
      %16 = vector.multi_reduction <add>, %15, %cst_13 [0] : vector<256x128xf32> to vector<128xf32>
      %17 = vector.shape_cast %16 : vector<128xf32> to vector<1x128xf32>
      %18 = tpu.iota {dimensions = array<i32: 0>} : vector<8x128xi32>
      %c0_i32_14 = arith.constant 0 : i32
      %19 = vector.broadcast %c0_i32_14 : i32 to vector<8x128xi32>
      %20 = arith.cmpi eq, %18, %19 : vector<8x128xi32>
      %c1_i32 = arith.constant 1 : i32
      %21 = vector.broadcast %c1_i32 : i32 to vector<8x128xi32>
      %22 = arith.cmpi eq, %18, %21 : vector<8x128xi32>
      %cst_15 = arith.constant 0.000000e+00 : f32
      %23 = vector.shape_cast %17 : vector<1x128xf32> to vector<1x128xf32>
      %24 = vector.broadcast %23 : vector<1x128xf32> to vector<8x128xf32>
      %25 = vector.broadcast %cst_15 : f32 to vector<8x128xf32>
      %26 = arith.select %22, %24, %25 : vector<8x128xi1>, vector<8x128xf32>
      %27 = vector.shape_cast %14 : vector<1x128xf32> to vector<1x128xf32>
      %28 = vector.broadcast %27 : vector<1x128xf32> to vector<8x128xf32>
      %29 = arith.select %20, %28, %26 : vector<8x128xi1>, vector<8x128xf32>
      %c0_16 = arith.constant 0 : index
      %c0_17 = arith.constant 0 : index
      %30 = vector.load %arg5[%c0_16, %c0_17] : memref<8x128xf32, #tpu.memory_space<vmem>>, vector<8x128xf32>
      tpu.vector_store %arg5[%c0_16, %c0_17], %29 {strides = array<i32>} : memref<8x128xf32, #tpu.memory_space<vmem>>, vector<8x128xf32>,
      %31 = tpu.transpose %12, [1, 0] : vector<256x128xf32> -> vector<128x256xf32>
      %32 = arith.truncf %31 : vector<128x256xf32> to vector<128x256xbf16>
      %c0_18 = arith.constant 0 : index
      %c0_19 = arith.constant 0 : index
      %33 = vector.load %arg4[%c0_18, %c0_19] : memref<128x256xbf16, #tpu.memory_space<vmem>>, vector<128x256xbf16>
      tpu.vector_store %arg4[%c0_18, %c0_19], %32 {strides = array<i32>} : memref<128x256xbf16, #tpu.memory_space<vmem>>, vector<128x256xbf16>,
    } else {
    }
    return
  }
  func.func @transform_0(%arg0: i32, %arg1: i32) -> (i32, i32) {
    %c0_i32 = arith.constant 0 : i32
    return %arg0, %arg1 : i32, i32
  }
  func.func @transform_1(%arg0: i32, %arg1: i32) -> (i32, i32) {
    %c0_i32 = arith.constant 0 : i32
    %c0_i32_0 = arith.constant 0 : i32
    return %arg1, %c0_i32 : i32, i32
  }
  func.func @transform_2(%arg0: i32, %arg1: i32) -> (i32, i32) {
    %c0_i32 = arith.constant 0 : i32
    %c0_i32_0 = arith.constant 0 : i32
    return %c0_i32, %arg0 : i32, i32
  }
  func.func @transform_3(%arg0: i32, %arg1: i32) -> (i32, i32) {
    %c0_i32 = arith.constant 0 : i32
    %c0_i32_0 = arith.constant 0 : i32
    return %arg0, %c0_i32 : i32, i32
  }
}

</mosaic_0001>

<bundles_post_ra>
// kernel: tpu_custom_call.1
= control target key start
LH: loop header
LB: loop body
LE: loop exit
PB: predicated region body
PF: predicated region fallthrough
CT: control target
= control target key end

     0   :  { %9 = vsyncpa [#allocation4], 0  ;;  %s2133_s0 = inlined_call_operand.hbm [shape: bf16[512,128], index: 0, kind: input, shape index: {}]   ;;  %s2134_s1 = inlined_call_operand.hbm [shape: bf16[128,128], index: 1, kind: input, shape index: {}]   ;;  %s2135_s2 = inlined_call_operand.hbm [shape: bf16[128,512], index: 2, kind: output, shape index: {0}]   ;;  %s2136_s3 = inlined_call_operand.hbm [shape: f32[16,128], index: 3, kind: output, shape index: {1}]  }
   0x1   :  { %11 = vsyncpa [#allocation4 + $0x1], 0 }
   0x2   :  { %12 = vsyncpa [#allocation7], 0 }
   0x3   :  { %13 = vsyncpa [#allocation5], 0 }
   0x4   :  { %15 = vsyncpa [#allocation5 + $0x1], 0 }
   0x5   :  { %16 = vsyncpa [#allocation10], 0 }
   0x6   :  { %18 = vsyncpa [#allocation10 + $0x1], 0  ;;  %s1794_s12 = smov 0   ;;  %s1796_s13 = smov 0  }
   0x7   :  { %s1798_s14 = smov 0   ;;  %s1800_s15 = smov 0  }
   0x8   :  { %s1802_s16 = smov 0   ;;  %s1804_s17 = smov 0  }
   0x9 LB: > { %s1210_s18 = sadd.s32 4294967295, %s1763_s17   ;;  %s1211_s19 = sadd.s32 4294967294, %s1763_s17   ;;  %s1763_s17 = sphi %s1804_s17, %s24_s17   ;;  %s1759_s16 = sphi %s1802_s16, %s2158_s16   ;;  %s1755_s15 = sphi %s1800_s15, %s2157_s15   ;;  %s1751_s14 = sphi %s1798_s14, %s2156_s14   ;;  %s1747_s13 = sphi %s1796_s13, %s2155_s13   ;;  %s1743_s12 = sphi %s1794_s12, %s2154_s12  }
   0xa   : > { %p58_p0 = scmp.ne.s32.totalorder %s1747_s13, %s1743_s12  ;;  %p1828_p1 = scmp.eq.s32.totalorder %s1210_s18, 0 }
   0xb   : > { %p1832_p2 = scmp.eq.s32.totalorder %s1210_s18, 1  ;;  %p114_p3 = scmp.eq.s32.totalorder %s1211_s19, 1 }
   0xc   : > { %p1838_p4 = por %p1828_p1, %p58_p0  ;;  %p1212_p5 = scmp.ge.s32.totalorder %s1763_s17, 1 }
   0xd   : > { %p1843_p6 = por %p114_p3, %p58_p0  ;;  %p147_p7 = scmp.lt.s32.totalorder %s1763_s17, 3 }
   0xe   : > { %s2142_s22 = scalar_select %p1838_p4, 1, 0 }
   0xf   : > { %s2143_s23 = scalar_select %p1843_p6, 1, 0 }
  0x10   : > { %p1848_p8 = pnand %p1212_p5, %p147_p7  ;;  %s1765_s25 = smov [#allocation6]  }
  0x11   : > { %s162_s26 = sshll.u32 %s1765_s25, 4  ;;  %s36_s28 = sadd.s32 1, %s1759_s16  ;;  %s163_s26 = int_to_ptr.vmem [resolvable:$true] %s162_s26 }
  0x12   : > { %p1386_p9 = pneg %p1848_p8  ;;  %s1606_s29 = scalar_lea.vmem %s163_s26, 1024 }
  0x13   : > { %p1607_p13 = scmp.ne.s32.totalorder %s163_s26, %s1606_s29  ;;  %p1614_p5 = scmp.lt.s32.totalorder %s163_s26, %s163_s26 }
  0x14   : > { %p1857_p11 = pnand %p1386_p9, %p1828_p1  ;;  %p1615_p7 = scmp.lt.s32.totalorder %s1606_s29, %s1606_s29 }
  0x16   : > { %p1597_p12 = pneg %p1857_p11  ;;  %p1616_p6 = por %p1615_p7, %p1614_p5 }
  0x18   : > { %p1609_p0 = pnand %p1607_p13, %p1597_p12 }
  0x1a   : > { %p1610_p3 = pneg %p1609_p0 }
  0x1c   : > { %p1617_p4 = pnand %p1616_p6, %p1610_p3 }
  0x1e   : > { %1620 = shalt.err (!%p1617_p4)
}
  0x1f   : > { %s2138_s30 = smov 64   ;;  %s2139_s4 = smov 4  }
  0x20   : > { %1389 = dma.hbm_to_vmem [thread:$0]  (!%p1857_p11), %s2134_s1, 1024, %s163_s26, [#allocation7], %s2138_s30, %s2138_s30, %s2139_s4  }
  0x21   : > { %p38_p4 = scmp.ge.s32.totalorder %s36_s28, 2  ;;  %s45_s7 = sadd.s32 1, %s1751_s14 }
  0x22   : > { %p52_p6 = scmp.ne.s32.totalorder %s1751_s14, %s1747_s13  ;;  %p53_p9 = scmp.eq.s32.totalorder %s1763_s17, 0 }
  0x23   : > { %s2160_s28 = smov (%p38_p4, %s36_s28), 0  ;;  %p1402_p0 = scmp.lt.s32.totalorder %s1763_s17, 2 }
  0x24   : > { %p1878_p12 = por %p53_p9, %p52_p6  ;;  %p1884_p13 = por %p1832_p2, %p52_p6 }
  0x25   : > { %s40_s10 = ssub.s32 %s1759_s16, %s2160_s28  ;;  %s176_s11 = sand.u32 1, %s1751_s14  }
  0x26   : > { %p43_p11 = scmp.eq.s32.totalorder %s40_s10, 0  ;;  %s1215_s18 = sshll.u32 %s176_s11, 7 }
  0x27   : > { %s1270_s25 = sshll.u32 %s1759_s16, 11  ;;  %s180_s5 = scalar_lea.vmem [#allocation3], %s1215_s18 }
  0x28   : > { %s1893_s19 = scalar_select %p43_p11, %s1751_s14, %s45_s7  }
  0x29   : > { %s187_s29 = scalar_lea.hbm %s2133_s0, %s1270_s25  ;;  %s188_s6 = sshll.u32 %s180_s5, 4  ;;  %s189_s6 = int_to_ptr.vmem [resolvable:$true] %s188_s6 }
  0x2a   : > { %p1901_p2 = pnand %p1402_p0, %p1878_p12  ;;  %s177_s30 = scalar_lea.sflag [#allocation4], %s176_s11 }
  0x2b   : > { %s1634_s10 = scalar_lea.vmem %s189_s6, 2048  ;;  %s1768_s7 = smov [#allocation3]  }
  0x2c   : > { %p1623_p3 = pneg %p1901_p2  ;;  %p1635_p5 = scmp.ne.s32.totalorder %s189_s6, %s1634_s10 }
  0x2d   : > { %s1639_s4 = sshll.u32 %s1768_s7, 4  ;;  %s1640_s4 = int_to_ptr.vmem [resolvable:$false] %s1639_s4 }
  0x2e   : > { %p1637_p7 = pnand %p1635_p5, %p1623_p3  ;;  %s1641_s25 = scalar_lea.vmem %s1640_s4, 4096 }
  0x2f   : > { %p1642_p6 = scmp.lt.s32.totalorder %s189_s6, %s1640_s4  ;;  %p1643_p9 = scmp.lt.s32.totalorder %s1641_s25, %s1634_s10 }
  0x30   : > { %p1638_p4 = pneg %p1637_p7 }
  0x31   : > { %p1644_p11 = por %p1643_p9, %p1642_p6 }
  0x33   : > { %p1645_p10 = pnand %p1644_p11, %p1638_p4 }
  0x35   : > { %1648 = shalt.err (!%p1645_p10)
}
  0x36   : > { %s2149_s8 = smov 4   ;;  %s2150_s18 = smov 64  }
  0x37   : > { %1393 = dma.hbm_to_vmem [thread:$0]  (!%p1901_p2), %s187_s29, 2048, %s189_s6, %s177_s30, %s2150_s18, %s2150_s18, %s2149_s8  }
  0x38   : > { %200 = sbr.rel (%p1848_p8) target bundleno = 498 (0x1f2), region = 28  ;;  %s1915_s11 = sand.u32 (!%p1848_p8), 1, %s1747_s13  }
  0x39   : > { %s1219_s4 = sshll.u32 (!%p1848_p8), %s1915_s11, 7  ;;  %s203_s26 = scalar_lea.sflag (!%p1848_p8), [#allocation4], %s1915_s11 }
  0x3a   : > { %s1921_s27 = scalar_lea.vmem (!%p1848_p8), [#allocation3], %s1219_s4  ;;  %p2151_p10 = scmp.ne.s32.totalorder (!%p1848_p8), %s2142_s22, 0 }
  0x3d   : > { %1726 = dma.done.wait (%p2151_p10), %s203_s26, 2048  }
  0x3e   : > { %1728 = vsyncadd (%p2151_p10), %s203_s26, 4294965248 }
  0x3f   : > { %1730 = dma.done.wait (%p1828_p1), [#allocation7], 1024  }
  0x40   : > { %1732 = vsyncadd (%p1828_p1), [#allocation7], 4294966272  ;;  %v1571_v0 = vld [vmem:[#allocation6 + $0x38] sm:$0xff]   ;;  %v1572_v1 = vld [vmem:[#allocation6 + $0x30] sm:$0xff]   ;;  %s1222_s20 = sshll.u32 %s1915_s11, 3  ;;  %s1287_s22 = sshll.u32 %s1755_s15, 7 }
  0x41   : > { %1312 = vmatprep.subr.bf16.mxu0 %v1571_v0  ;;  %1360 = vmatprep.subr.bf16.mxu1 %v1571_v0  ;;  %v1573_v2 = vld [vmem:[#allocation6 + $0x28] sm:$0xff]   ;;  %v1574_v3 = vld [vmem:[#allocation6 + $0x20] sm:$0xff]   ;;  %v1575_v6 = vld [vmem:[#allocation6 + $0x18] sm:$0xff]   ;;  %s237_s24 = scalar_lea.vmem [#allocation9], %s1222_s20  ;;  %s2038_s6 = scalar_lea.hbm %s2136_s3, %s1287_s22 }
  0x42   : > { %1313 = vmatpush3.bf16.msra.mxu0 %v1571_v0  ;;  %1368 = vmatpush3.bf16.msra.mxu1 %v1571_v0  ;;  %v1579_v4 = vld [vmem:[%s1921_s27] sm:$0xff]   ;;  %v1576_v7 = vld [vmem:[#allocation6 + $0x10] sm:$0xff]   ;;  %v1577_v8 = vld [vmem:[#allocation6 + $0x8] sm:$0xff]   ;;  %s1086_s30 = sshll.u32 %s237_s24, 4  ;;  %s1057_s21 = scalar_lea.sflag [#allocation10], %s1915_s11  ;;  %s1087_s30 = int_to_ptr.vmem [resolvable:$true] %s1086_s30 }
  0x43   : > { %1314 = vmatprep.subr.bf16.mxu0 %v1572_v1  ;;  %1361 = vmatprep.subr.bf16.mxu1 %v1572_v1  ;;  %v1580_v5 = vld [vmem:[%s1921_s27 + $0x40] sm:$0xff]   ;;  %v1581_v10 = vld [vmem:[%s1921_s27 + $0x8] sm:$0xff]   ;;  %v1583_v12 = vld [vmem:[%s1921_s27 + $0x10] sm:$0xff]   ;;  %s1649_s10 = scalar_lea.vmem %s1087_s30, 128  ;;  %s1769_s7 = smov [#allocation9]  }
  0x44   : > { %1328 = vmatprep.mubr.bf16.mxu0 %v1579_v4  ;;  %1344 = vmatprep.mubr.bf16.mxu1 %v1580_v5  ;;  %v1578_v9 = vld [vmem:[#allocation6] sm:$0xff]   ;;  %v1582_v11 = vld [vmem:[%s1921_s27 + $0x48] sm:$0xff]   ;;  %v1585_v13 = vld [vmem:[%s1921_s27 + $0x50] sm:$0xff]   ;;  %p1650_p1 = scmp.ne.s32.totalorder %s1087_s30, %s1649_s10  ;;  %s1653_s25 = sshll.u32 %s1769_s7, 4  ;;  %s1654_s25 = int_to_ptr.vmem [resolvable:$false] %s1653_s25 }
  0x45   : > { %v1584_v14 = vld [vmem:[%s1921_s27 + $0x18] sm:$0xff]   ;;  %v1587_v16 = vld [vmem:[%s1921_s27 + $0x20] sm:$0xff]   ;;  %v1588_v18 = vld [vmem:[%s1921_s27 + $0x28] sm:$0xff]   ;;  %s1655_s8 = scalar_lea.vmem %s1654_s25, 256  ;;  %p1656_p0 = scmp.lt.s32.totalorder %s1087_s30, %s1654_s25 }
  0x46   : > { %1315 = vmatpush3.bf16.msra.mxu0 %v1572_v1  ;;  %1369 = vmatpush3.bf16.msra.mxu1 %v1572_v1  ;;  %v1586_v15 = vld [vmem:[%s1921_s27 + $0x58] sm:$0xff]   ;;  %v1591_v17 = vld [vmem:[%s1921_s27 + $0x60] sm:$0xff]   ;;  %v1592_v19 = vld [vmem:[%s1921_s27 + $0x68] sm:$0xff]   ;;  %p1651_p8 = pnand %p1650_p1, %p1884_p13  ;;  %p1657_p2 = scmp.lt.s32.totalorder %s1655_s8, %s1649_s10 }
  0x47   : > { %1316 = vmatprep.subr.bf16.mxu0 %v1573_v2  ;;  %1362 = vmatprep.subr.bf16.mxu1 %v1573_v2  ;;  %v1589_v20 = vld [vmem:[%s1921_s27 + $0x30] sm:$0xff]   ;;  %v1590_v22 = vld [vmem:[%s1921_s27 + $0x38] sm:$0xff]  }
  0x48   : > { %v1593_v21 = vld [vmem:[%s1921_s27 + $0x70] sm:$0xff]   ;;  %v1594_v23 = vld [vmem:[%s1921_s27 + $0x78] sm:$0xff]   ;;  %p1652_p12 = pneg %p1651_p8  ;;  %p1658_p3 = por %p1657_p2, %p1656_p0 }
  0x4a   : > { %1317 = vmatpush3.bf16.msra.mxu0 %v1573_v2  ;;  %1370 = vmatpush3.bf16.msra.mxu1 %v1573_v2  ;;  %p1659_p5 = pnand %p1658_p3, %p1652_p12 }
  0x4b   : > { %1318 = vmatprep.subr.bf16.mxu0 %v1574_v3  ;;  %1363 = vmatprep.subr.bf16.mxu1 %v1574_v3 }
  0x4e   : > { %1319 = vmatpush3.bf16.msra.mxu0 %v1574_v3  ;;  %1371 = vmatpush3.bf16.msra.mxu1 %v1574_v3 }
  0x4f   : > { %1320 = vmatprep.subr.bf16.mxu0 %v1575_v6  ;;  %1364 = vmatprep.subr.bf16.mxu1 %v1575_v6 }
  0x52   : > { %1321 = vmatpush3.bf16.msra.mxu0 %v1575_v6  ;;  %1372 = vmatpush3.bf16.msra.mxu1 %v1575_v6 }
  0x53   : > { %1322 = vmatprep.subr.bf16.mxu0 %v1576_v7  ;;  %1365 = vmatprep.subr.bf16.mxu1 %v1576_v7 }
  0x56   : > { %1323 = vmatpush3.bf16.msra.mxu0 %v1576_v7  ;;  %1373 = vmatpush3.bf16.msra.mxu1 %v1576_v7 }
  0x57   : > { %1324 = vmatprep.subr.bf16.mxu0 %v1577_v8  ;;  %1366 = vmatprep.subr.bf16.mxu1 %v1577_v8 }
  0x5a   : > { %1325 = vmatpush3.bf16.msra.mxu0 %v1577_v8  ;;  %1374 = vmatpush3.bf16.msra.mxu1 %v1577_v8 }
  0x5b   : > { %1326 = vmatprep.subr.bf16.mxu0 %v1578_v9  ;;  %1367 = vmatprep.subr.bf16.mxu1 %v1578_v9 }
  0x5e   : > { %1327 = vmatpush3.bf16.msra.mxu0 %v1578_v9  ;;  %1375 = vmatpush3.bf16.msra.mxu1 %v1578_v9 }
  0x61   : > { %1329 = vmatmul.mubr.bf16.vlgmr.msra.gmra.mxu0 %v1581_v10  ;;  %1345 = vmatmul.mubr.bf16.vlgmr.msra.gmra.mxu1 %v1582_v11 }
  0x62   : > { %1332 = vmatprep.mubr.bf16.mxu0 %v1583_v12  ;;  %1348 = vmatprep.mubr.bf16.mxu1 %v1585_v13 }
  0x69   : > { %1333 = vmatmul.mubr.bf16.gmra.mxu0 %v1584_v14  ;;  %1349 = vmatmul.mubr.bf16.gmra.mxu1 %v1586_v15 }
  0x6a   : > { %1336 = vmatprep.mubr.bf16.mxu0 %v1587_v16  ;;  %1352 = vmatprep.mubr.bf16.mxu1 %v1591_v17 }
  0x71   : > { %1337 = vmatmul.mubr.bf16.gmra.mxu0 %v1588_v18  ;;  %1353 = vmatmul.mubr.bf16.gmra.mxu1 %v1592_v19 }
  0x72   : > { %1340 = vmatprep.mubr.bf16.mxu0 %v1589_v20  ;;  %1356 = vmatprep.mubr.bf16.mxu1 %v1593_v21 }
  0x79   : > { %1341 = vmatmul.mubr.bf16.gmra.mxu0 %v1590_v22  ;;  %1357 = vmatmul.mubr.bf16.gmra.mxu1 %v1594_v23 }
 0x121   : > { %v1330_v24 = vpop.f32.mrf.mxu0  ;;  %v1947_v25 = vpop.f32.mrf.mxu1 }
 0x122   : > { %v801_v39 = vmul.f32 %v1330_v24, %v1330_v24  ;;  %v1463_v43 = vpack.i.bf16 %v1947_v25, %v1330_v24 }
 0x123   : > { %v536_v26 = vpop.f32.mrf.mxu0  ;;  %v1949_v27 = vpop.f32.mrf.mxu1 }
 0x124   : > { %v1459_v28 = vpack.i.bf16 %v1949_v27, %v536_v26  ;;  %v799_v33 = vmul.f32 %v536_v26, %v536_v26 }
 0x125   : > { %v1331_v29 = vpop.f32.mrf.mxu0  ;;  %v1952_v30 = vpop.f32.mrf.mxu1 }
 0x126   : > { %1460 = vxpose.xlu0.b32.start [1/16] %v1459_v28, 128  ;;  %v802_v44 = vmul.f32 %v1331_v29, %v1331_v29  ;;  %v1465_v53 = vpack.i.bf16 %v1952_v30, %v1331_v29 }
 0x127   : > { %v539_v31 = vpop.f32.mrf.mxu0  ;;  %v1954_v32 = vpop.f32.mrf.mxu1 }
 0x128   : > { %v762_v34 = vadd.f32 %v539_v31, %v536_v26  ;;  %v800_v35 = vmul.f32 %v539_v31, %v539_v31  ;;  %v1461_v36 = vpack.i.bf16 %v1954_v32, %v539_v31 }
 0x129   : > { %v1334_v37 = vpop.f32.mrf.mxu0  ;;  %v1957_v38 = vpop.f32.mrf.mxu1 }
 0x12a   : > { %v763_v40 = vadd.f32 %v1330_v24, %v762_v34  ;;  %v831_v41 = vadd.f32 %v800_v35, %v799_v33  ;;  %1462 = vxpose.xlu0.b32.cont [2/16] %v1461_v36, 128  ;;  %v805_v54 = vmul.f32 %v1334_v37, %v1334_v37  ;;  %v1471_v23 = vpack.i.bf16 %v1957_v38, %v1334_v37 }
 0x12b   : > { %v552_v42 = vpop.f32.mrf.mxu0  ;;  %v1960_v48 = vpop.f32.mrf.mxu1 }
 0x12c   : > { %v832_v45 = vadd.f32 %v831_v41, %v801_v39  ;;  %v764_v46 = vadd.f32 %v1331_v29, %v763_v40  ;;  %v803_v47 = vmul.f32 %v552_v42, %v552_v42  ;;  %v1467_v63 = vpack.i.bf16 %v1960_v48, %v552_v42 }
 0x12d   : > { %v1335_v49 = vpop.f32.mrf.mxu0  ;;  %v1963_v58 = vpop.f32.mrf.mxu1 }
 0x12e   : > { %v765_v50 = vadd.f32 %v764_v46, %v552_v42  ;;  %v833_v51 = vadd.f32 %v832_v45, %v802_v44  ;;  %1464 = vxpose.xlu0.b32.cont [3/16] %v1463_v43, 128  ;;  %v806_v0 = vmul.f32 %v1335_v49, %v1335_v49  ;;  %v1473_v33 = vpack.i.bf16 %v1963_v58, %v1335_v49 }
 0x12f   : > { %v555_v52 = vpop.f32.mrf.mxu0  ;;  %v1968_v2 = vpop.f32.mrf.mxu1 }
 0x130   : > { %v834_v55 = vadd.f32 %v833_v51, %v803_v47  ;;  %v766_v56 = vadd.f32 %v765_v50, %v555_v52  ;;  %v804_v57 = vmul.f32 %v555_v52, %v555_v52  ;;  %v1469_v9 = vpack.i.bf16 %v1968_v2, %v555_v52 }
 0x131   : > { %v1965_v59 = vpop.f32.mrf.mxu0  ;;  %v1977_v15 = vpop.f32.mrf.mxu1  ;;  %v815_v47 = vmul.f32 %v1949_v27, %v1949_v27  ;;  %v816_v51 = vmul.f32 %v1954_v32, %v1954_v32 }
 0x132   : > { %v767_v60 = vadd.f32 %v1334_v37, %v766_v56  ;;  %v835_v61 = vadd.f32 %v834_v55, %v804_v57  ;;  %1466 = vxpose.xlu0.b32.cont [4/16] %v1465_v53, 128  ;;  %v809_v10 = vmul.f32 %v1965_v59, %v1965_v59  ;;  %v817_v56 = vmul.f32 %v1947_v25, %v1947_v25 }
 0x133   : > { %v568_v62 = vpop.f32.mrf.mxu0  ;;  %v632_v26 = vpop.f32.mrf.mxu1 }
 0x134   : > { %v836_v1 = vadd.f32 %v835_v61, %v805_v54  ;;  %v768_v3 = vadd.f32 %v1335_v49, %v767_v60  ;;  %v807_v4 = vmul.f32 %v568_v62, %v568_v62  ;;  %v1475_v45 = vpack.i.bf16 %v632_v26, %v568_v62 }
 0x135   : > { %v1970_v5 = vpop.f32.mrf.mxu0  ;;  %v1355_v40 = vpop.f32.mrf.mxu1 }
 0x136   : > { %v769_v6 = vadd.f32 %v768_v3, %v568_v62  ;;  %v837_v7 = vadd.f32 %v836_v1, %v806_v0  ;;  %1468 = vxpose.xlu0.b32.cont [5/16] %v1467_v63, 128  ;;  %v810_v16 = vmul.f32 %v1970_v5, %v1970_v5  ;;  %v1479_v63 = vpack.i.bf16 %v1977_v15, %v1965_v59 }
 0x137   : > { %v571_v8 = vpop.f32.mrf.mxu0  ;;  %v635_v46 = vpop.f32.mrf.mxu1  ;;  %v819_v0 = vmul.f32 %v1960_v48, %v1960_v48 }
 0x138   : > { %v838_v11 = vadd.f32 %v837_v7, %v807_v4  ;;  %v770_v12 = vadd.f32 %v769_v6, %v571_v8  ;;  %v808_v13 = vmul.f32 %v571_v8, %v571_v8  ;;  %v1477_v54 = vpack.i.bf16 %v635_v46, %v571_v8 }
 0x139   : > { %v1975_v14 = vpop.f32.mrf.mxu0  ;;  %v1358_v55 = vpop.f32.mrf.mxu1 }
 0x13a   : > { %v771_v17 = vadd.f32 %v1965_v59, %v770_v12  ;;  %v839_v18 = vadd.f32 %v838_v11, %v808_v13  ;;  %1470 = vxpose.xlu0.b32.cont [6/16] %v1469_v9, 128  ;;  %v813_v34 = vmul.f32 %v1975_v14, %v1975_v14  ;;  %v821_v59 = vmul.f32 %v1957_v38, %v1957_v38 }
 0x13b   : > { %v1982_v19 = vpop.f32.mrf.mxu0  ;;  %v823_v13 = vmul.f32 %v632_v26, %v632_v26 }
 0x13c   : > { %v840_v20 = vadd.f32 %v839_v18, %v809_v10  ;;  %v772_v21 = vadd.f32 %v1970_v5, %v771_v17  ;;  %v811_v22 = vmul.f32 %v1982_v19, %v1982_v19  ;;  %v824_v18 = vmul.f32 %v635_v46, %v635_v46 }
 0x13d   : > { %v1988_v24 = vpop.f32.mrf.mxu0 }
 0x13e   : > { %v773_v28 = vadd.f32 %v772_v21, %v1982_v19  ;;  %v841_v29 = vadd.f32 %v840_v20, %v810_v16  ;;  %1472 = vxpose.xlu0.b32.cont [7/16] %v1471_v23, 128  ;;  %v814_v37 = vmul.f32 %v1988_v24, %v1988_v24 }
 0x13f   : > { %v587_v31 = vpop.f32.mrf.mxu0 }
 0x140   : > { %v842_v35 = vadd.f32 %v841_v29, %v811_v22  ;;  %v774_v36 = vadd.f32 %v773_v28, %v587_v31  ;;  %v812_v39 = vmul.f32 %v587_v31, %v587_v31 }
 0x142   : > { %v775_v41 = vadd.f32 %v1975_v14, %v774_v36  ;;  %v843_v42 = vadd.f32 %v842_v35, %v812_v39  ;;  %1474 = vxpose.xlu0.b32.cont [8/16] %v1473_v33, 128 }
 0x144   : > { %v776_v43 = vadd.f32 %v1988_v24, %v775_v41  ;;  %v844_v44 = vadd.f32 %v843_v42, %v813_v34 }
 0x146   : > { %v777_v49 = vadd.f32 %v776_v43, %v1949_v27  ;;  %v845_v50 = vadd.f32 %v844_v44, %v814_v37  ;;  %1476 = vxpose.xlu0.b32.cont [9/16] %v1475_v45, 128  ;;  %v818_v27 = vmul.f32 %v1952_v30, %v1952_v30  ;;  %v829_v37 = vmul.f32 %v1358_v55, %v1358_v55 }
 0x148   : > { %v778_v52 = vadd.f32 %v777_v49, %v1954_v32  ;;  %v846_v53 = vadd.f32 %v845_v50, %v815_v47  ;;  %v648_v32 = vpop.f32.mrf.mxu1  ;;  %v868_v47 = vlaneseq }
 0x149   : > { %v1483_v12 = vpack.i.bf16 %v648_v32, %v1982_v19  ;;  %v1487_v19 = vpack.i.bf16 %v1358_v55, %v1975_v14 }
 0x14a   : > { %v779_v57 = vadd.f32 %v1947_v25, %v778_v52  ;;  %v847_v60 = vadd.f32 %v846_v53, %v816_v51  ;;  %1478 = vxpose.xlu0.b32.cont [10/16] %v1477_v54, 128  ;;  %v820_v25 = vmul.f32 %v1968_v2, %v1968_v2  ;;  %v1359_v7 = vpop.f32.mrf.mxu1 }
 0x14b   : > { %v830_v42 = vmul.f32 %v1359_v7, %v1359_v7 }
 0x14c   : > { %v780_v61 = vadd.f32 %v1952_v30, %v779_v57  ;;  %v848_v62 = vadd.f32 %v847_v60, %v817_v56  ;;  %v1481_v30 = vpack.i.bf16 %v1355_v40, %v1970_v5 }
 0x14e   : > { %v849_v1 = vadd.f32 %v848_v62, %v818_v27  ;;  %v781_v3 = vadd.f32 %v780_v61, %v1960_v48  ;;  %1480 = vxpose.xlu0.b32.cont [11/16] %v1479_v63, 128  ;;  %v822_v48 = vmul.f32 %v1963_v58, %v1963_v58 }
 0x150   : > { %v782_v4 = vadd.f32 %v781_v3, %v1968_v2  ;;  %v850_v6 = vadd.f32 %v849_v1, %v819_v0  ;;  %v651_v2 = vpop.f32.mrf.mxu1 }
 0x151   : > { %v1485_v21 = vpack.i.bf16 %v651_v2, %v587_v31  ;;  %v828_v39 = vmul.f32 %v651_v2, %v651_v2  ;;  %v1489_v31 = vpack.i.bf16 %v1359_v7, %v1988_v24  ;;  %v869_v24 = vshrl.u32 %v868_v47, 7 }
 0x152   : > { %v783_v8 = vadd.f32 %v1957_v38, %v782_v4  ;;  %v851_v9 = vadd.f32 %v850_v6, %v820_v25  ;;  %1482 = vxpose.xlu0.b32.cont [12/16] %v1481_v30, 128  ;;  %v825_v38 = vmul.f32 %v1977_v15, %v1977_v15 }
 0x153   : > { %vm871_vm0 = vcmp.eq.s32.totalorder %v869_v24, 1  ;;  %vm870_vm1 = vcmp.eq.s32.totalorder %v869_v24, 0 }
 0x154   : > { %v784_v10 = vadd.f32 %v1963_v58, %v783_v8  ;;  %v852_v11 = vadd.f32 %v851_v9, %v821_v59  ;;  %v826_v58 = vmul.f32 %v1355_v40, %v1355_v40 }
 0x156   : > { %v785_v16 = vadd.f32 %v784_v10, %v632_v26  ;;  %v853_v5 = vadd.f32 %v852_v11, %v822_v48  ;;  %1484 = vxpose.xlu0.b32.cont [13/16] %v1483_v12, 128  ;;  %v827_v26 = vmul.f32 %v648_v32, %v648_v32 }
 0x158   : > { %v786_v17 = vadd.f32 %v785_v16, %v635_v46  ;;  %v854_v20 = vadd.f32 %v853_v5, %v823_v13 }
 0x15a   : > { %v787_v22 = vadd.f32 %v1977_v15, %v786_v17  ;;  %v855_v23 = vadd.f32 %v854_v20, %v824_v18  ;;  %1486 = vxpose.xlu0.b32.cont [14/16] %v1485_v21, 128 }
 0x15c   : > { %v856_v28 = vadd.f32 %v855_v23, %v825_v38  ;;  %v788_v29 = vadd.f32 %v1355_v40, %v787_v22 }
 0x15e   : > { %v789_v33 = vadd.f32 %v788_v29, %v648_v32  ;;  %v857_v34 = vadd.f32 %v856_v28, %v826_v58  ;;  %1488 = vxpose.xlu0.b32.cont [15/16] %v1487_v19, 128 }
 0x160   : > { %v858_v35 = vadd.f32 %v857_v34, %v827_v26  ;;  %v790_v36 = vadd.f32 %v789_v33, %v651_v2 }
 0x162   : > { %v791_v41 = vadd.f32 %v1358_v55, %v790_v36  ;;  %v859_v15 = vadd.f32 %v858_v35, %v828_v39  ;;  %1490 = vxpose.xlu0.b32.end [16/16] %v1489_v31, 128 }
 0x164   : > { %v792_v43 = vadd.f32 %v1359_v7, %v791_v41  ;;  %v860_v40 = vadd.f32 %v859_v15, %v829_v37 }
 0x166   : > { %v793_v44 = vrot.slane %v792_v43, 4  ;;  %v861_v14 = vadd.f32 %v860_v40, %v830_v42 }
 0x168   : > { %v794_v45 = vadd.f32 %v793_v44, %v792_v43  ;;  %v862_v46 = vrot.slane %v861_v14, 4 }
 0x16a   : > { %v795_v49 = vrot.slane %v794_v45, 2  ;;  %v863_v50 = vadd.f32 %v862_v46, %v861_v14 }
 0x16c   : > { %v796_v51 = vadd.f32 %v795_v49, %v794_v45  ;;  %v864_v52 = vrot.slane %v863_v50, 2 }
 0x16e   : > { %v865_v53 = vadd.f32 %v864_v52, %v863_v50  ;;  %v797_v54 = vrot.slane %v796_v51, 1 }
 0x170   : > { %v866_v55 = vrot.slane %v865_v53, 1  ;;  %v798_v57 = vadd.f32 %v797_v54, %v796_v51 }
 0x172   : > { %v867_v56 = vadd.f32 %v866_v55, %v865_v53 }
 0x174   : > { %v872_v60 = vsel %vm871_vm0, %v867_v56, 0.0 }
 0x175   : > { %v873_v27 = vsel %vm870_vm1, %v798_v57, %v872_v60 }
 0x176   : > { %874 = vst [vmem:[%s237_s24] sm:$0xff] %v873_v27 }
 0x177   : > { %1662 = shalt.err (!%p1659_p5)
}
 0x178   : > { %s1663_s18 = scalar_lea.hbm %s2038_s6, 128  ;;  %s1667_s20 = scalar_lea.hbm %s2136_s3, 256 }
 0x179   : > { %p1664_p7 = scmp.ne.s32.totalorder %s2038_s6, %s1663_s18  ;;  %p1668_p9 = scmp.lt.s32.totalorder %s2038_s6, %s2136_s3 }
 0x17a   : > { %p1669_p11 = scmp.lt.s32.totalorder %s1667_s20, %s1663_s18 }
 0x17b   : > { %p1665_p4 = pnand %p1664_p7, %p1884_p13 }
 0x17c   : > { %p1670_p10 = por %p1669_p11, %p1668_p9 }
 0x17d   : > { %p1666_p6 = pneg %p1665_p4 }
 0x17f   : > { %p1671_p1 = pnand %p1670_p10, %p1666_p6 }
 0x181   : > { %1674 = shalt.err (!%p1671_p1)
}
 0x182   : > { %1383 = dma.vmem_to_hbm [thread:$0]  (%p1884_p13), %s1087_s30, 128, %s2038_s6, %s1057_s21  }
 0x183   : > { %s2059_s5 = scalar_lea.vmem [#allocation8], %s1219_s4  ;;  %s2082_s21 = scalar_lea.hbm %s2135_s2, %s1287_s22 }
 0x184   : > { %s1070_s4 = sshll.u32 %s2059_s5, 4  ;;  %s1052_s10 = scalar_lea.sflag [#allocation5], %s1915_s11  ;;  %s2084_s4 = int_to_ptr.vmem [resolvable:$true] %s1070_s4 }
 0x185   : > { %s1675_s7 = scalar_lea.vmem %s2084_s4, 2048  ;;  %s1770_s25 = smov [#allocation8]  }
 0x186   : > { %p1676_p8 = scmp.ne.s32.totalorder %s2084_s4, %s1675_s7  ;;  %s1679_s15 = sshll.u32 %s1770_s25, 4  ;;  %s1680_s15 = int_to_ptr.vmem [resolvable:$false] %s1679_s15 }
 0x187   : > { %s1681_s8 = scalar_lea.vmem %s1680_s15, 4096  ;;  %p1682_p2 = scmp.lt.s32.totalorder %s2084_s4, %s1680_s15 }
 0x188   : > { %p1677_p12 = pnand %p1676_p8, %p1884_p13  ;;  %p1683_p3 = scmp.lt.s32.totalorder %s1681_s8, %s1675_s7 }
 0x18a   : > { %p1678_p0 = pneg %p1677_p12  ;;  %p1684_p5 = por %p1683_p3, %p1682_p2 }
 0x18c   : > { %p1685_p7 = pnand %p1684_p5, %p1678_p0 }
 0x1a2   : > { %v1491_v61 = vpop.trf.xlu0 }
 0x1a3   : > { %v1495_v62 = vunpack.i.h.bf16 %v1491_v61  ;;  %v1492_v63 = vunpack.i.l.bf16 %v1491_v61 }
 0x1a5   : > { %v1271_v32 = vpack.c.bf16 %v1495_v62, %v1492_v63 }
 0x1a6   : > { %v1496_v0 = vpop.trf.xlu0 }
 0x1a7   : > { %1035 = vst [vmem:[%s2059_s5] sm:$0xff] %v1271_v32  ;;  %v1500_v1 = vunpack.i.h.bf16 %v1496_v0  ;;  %v1497_v3 = vunpack.i.l.bf16 %v1496_v0 }
 0x1a9   : > { %v1272_v25 = vpack.c.bf16 %v1500_v1, %v1497_v3 }
 0x1aa   : > { %v1501_v4 = vpop.trf.xlu0 }
 0x1ab   : > { %1036 = vst [vmem:[%s2059_s5 + $0x8] sm:$0xff] %v1272_v25  ;;  %v1505_v6 = vunpack.i.h.bf16 %v1501_v4  ;;  %v1502_v30 = vunpack.i.l.bf16 %v1501_v4 }
 0x1ad   : > { %v1273_v7 = vpack.c.bf16 %v1505_v6, %v1502_v30 }
 0x1ae   : > { %v1506_v59 = vpop.trf.xlu0 }
 0x1af   : > { %1037 = vst [vmem:[%s2059_s5 + $0x10] sm:$0xff] %v1273_v7  ;;  %v1510_v8 = vunpack.i.h.bf16 %v1506_v59  ;;  %v1507_v9 = vunpack.i.l.bf16 %v1506_v59 }
 0x1b1   : > { %v1274_v48 = vpack.c.bf16 %v1510_v8, %v1507_v9 }
 0x1b2   : > { %v1511_v10 = vpop.trf.xlu0 }
 0x1b3   : > { %1038 = vst [vmem:[%s2059_s5 + $0x18] sm:$0xff] %v1274_v48  ;;  %v1515_v11 = vunpack.i.h.bf16 %v1511_v10  ;;  %v1512_v12 = vunpack.i.l.bf16 %v1511_v10 }
 0x1b5   : > { %v1275_v2 = vpack.c.bf16 %v1515_v11, %v1512_v12 }
 0x1b6   : > { %v1516_v13 = vpop.trf.xlu0 }
 0x1b7   : > { %1039 = vst [vmem:[%s2059_s5 + $0x20] sm:$0xff] %v1275_v2  ;;  %v1520_v16 = vunpack.i.h.bf16 %v1516_v13  ;;  %v1517_v5 = vunpack.i.l.bf16 %v1516_v13 }
 0x1b9   : > { %v1276_v17 = vpack.c.bf16 %v1520_v16, %v1517_v5 }
 0x1ba   : > { %v1521_v18 = vpop.trf.xlu0 }
 0x1bb   : > { %1040 = vst [vmem:[%s2059_s5 + $0x28] sm:$0xff] %v1276_v17  ;;  %v1525_v20 = vunpack.i.h.bf16 %v1521_v18  ;;  %v1522_v21 = vunpack.i.l.bf16 %v1521_v18 }
 0x1bd   : > { %v1277_v38 = vpack.c.bf16 %v1525_v20, %v1522_v21 }
 0x1be   : > { %v1526_v22 = vpop.trf.xlu0 }
 0x1bf   : > { %1041 = vst [vmem:[%s2059_s5 + $0x30] sm:$0xff] %v1277_v38  ;;  %v1530_v23 = vunpack.i.h.bf16 %v1526_v22  ;;  %v1527_v58 = vunpack.i.l.bf16 %v1526_v22 }
 0x1c1   : > { %v1278_v28 = vpack.c.bf16 %v1530_v23, %v1527_v58 }
 0x1c2   : > { %v1531_v29 = vpop.trf.xlu0 }
 0x1c3   : > { %1042 = vst [vmem:[%s2059_s5 + $0x38] sm:$0xff] %v1278_v28  ;;  %v1535_v19 = vunpack.i.h.bf16 %v1531_v29  ;;  %v1532_v33 = vunpack.i.l.bf16 %v1531_v29 }
 0x1c5   : > { %v1279_v26 = vpack.c.bf16 %v1535_v19, %v1532_v33 }
 0x1c6   : > { %v1536_v34 = vpop.trf.xlu0 }
 0x1c7   : > { %1043 = vst [vmem:[%s2059_s5 + $0x40] sm:$0xff] %v1279_v26  ;;  %v1540_v35 = vunpack.i.h.bf16 %v1536_v34  ;;  %v1537_v36 = vunpack.i.l.bf16 %v1536_v34 }
 0x1c9   : > { %v1280_v39 = vpack.c.bf16 %v1540_v35, %v1537_v36 }
 0x1ca   : > { %v1541_v31 = vpop.trf.xlu0 }
 0x1cb   : > { %1044 = vst [vmem:[%s2059_s5 + $0x48] sm:$0xff] %v1280_v39  ;;  %v1545_v37 = vunpack.i.h.bf16 %v1541_v31  ;;  %v1542_v41 = vunpack.i.l.bf16 %v1541_v31 }
 0x1cd   : > { %v1281_v15 = vpack.c.bf16 %v1545_v37, %v1542_v41 }
 0x1ce   : > { %v1546_v42 = vpop.trf.xlu0 }
 0x1cf   : > { %1045 = vst [vmem:[%s2059_s5 + $0x50] sm:$0xff] %v1281_v15  ;;  %v1550_v43 = vunpack.i.h.bf16 %v1546_v42  ;;  %v1547_v40 = vunpack.i.l.bf16 %v1546_v42 }
 0x1d1   : > { %v1282_v44 = vpack.c.bf16 %v1550_v43, %v1547_v40 }
 0x1d2   : > { %v1551_v14 = vpop.trf.xlu0 }
 0x1d3   : > { %1046 = vst [vmem:[%s2059_s5 + $0x58] sm:$0xff] %v1282_v44  ;;  %v1555_v45 = vunpack.i.h.bf16 %v1551_v14  ;;  %v1552_v46 = vunpack.i.l.bf16 %v1551_v14 }
 0x1d5   : > { %v1283_v47 = vpack.c.bf16 %v1555_v45, %v1552_v46 }
 0x1d6   : > { %v1556_v49 = vpop.trf.xlu0 }
 0x1d7   : > { %1047 = vst [vmem:[%s2059_s5 + $0x60] sm:$0xff] %v1283_v47  ;;  %v1560_v50 = vunpack.i.h.bf16 %v1556_v49  ;;  %v1557_v51 = vunpack.i.l.bf16 %v1556_v49 }
 0x1d9   : > { %v1284_v52 = vpack.c.bf16 %v1560_v50, %v1557_v51 }
 0x1da   : > { %v1561_v24 = vpop.trf.xlu0 }
 0x1db   : > { %1048 = vst [vmem:[%s2059_s5 + $0x68] sm:$0xff] %v1284_v52  ;;  %v1565_v53 = vunpack.i.h.bf16 %v1561_v24  ;;  %v1562_v54 = vunpack.i.l.bf16 %v1561_v24 }
 0x1dd   : > { %v1285_v55 = vpack.c.bf16 %v1565_v53, %v1562_v54 }
 0x1de   : > { %v1566_v56 = vpop.trf.xlu0 }
 0x1df   : > { %1049 = vst [vmem:[%s2059_s5 + $0x70] sm:$0xff] %v1285_v55  ;;  %v1570_v57 = vunpack.i.h.bf16 %v1566_v56  ;;  %v1567_v60 = vunpack.i.l.bf16 %v1566_v56 }
 0x1e1   : > { %v1286_v27 = vpack.c.bf16 %v1570_v57, %v1567_v60 }
 0x1e3   : > { %1050 = vst [vmem:[%s2059_s5 + $0x78] sm:$0xff] %v1286_v27 }
 0x1e4   : > { %1688 = shalt.err (!%p1685_p7)
}
 0x1e5   : > { %s1689_s22 = scalar_lea.hbm %s2082_s21, 2048  ;;  %s1693_s27 = scalar_lea.hbm %s2135_s2, 4096 }
 0x1e6   : > { %p1690_p4 = scmp.ne.s32.totalorder %s2082_s21, %s1689_s22  ;;  %p1694_p11 = scmp.lt.s32.totalorder %s2082_s21, %s2135_s2 }
 0x1e7   : > { %p1695_p10 = scmp.lt.s32.totalorder %s1693_s27, %s1689_s22 }
 0x1e8   : > { %p1691_p6 = pnand %p1690_p4, %p1884_p13 }
 0x1e9   : > { %p1696_p1 = por %p1695_p10, %p1694_p11 }
 0x1ea   : > { %p1692_p9 = pneg %p1691_p6 }
 0x1ec   : > { %p1697_p8 = pnand %p1696_p1, %p1692_p9 }
 0x1ee   : > { %1700 = shalt.err (!%p1697_p8)
}
 0x1ef   : > { %s1771_s29 = smov 128   ;;  %s1772_s5 = smov 256  }
 0x1f0   : > { %s1773_s30 = smov 8  }
 0x1f1   : > { %1382 = dma.vmem_to_hbm [thread:$0]  (%p1884_p13), %s2084_s4, 2048, %s2082_s21, %s1052_s10, %s1771_s29, %s1772_s5, %s1773_s30  }
 0x1f2 PF: > { %s1098_s6 = sand.u32 1, %s1743_s12   ;;  %p2152_p12 = scmp.ne.s32.totalorder %s2143_s23, 0 }
 0x1f3   : > { %p2153_p0 = scmp.ge.s32.totalorder %s1763_s17, 2  ;;  %s1099_s7 = scalar_lea.sflag [#allocation5], %s1098_s6 }
 0x1f5   : > { %p1395_p2 = pnand %p2153_p0, %p2152_p12 }
 0x1f7   : > { %p1396_p3 = pneg %p1395_p2 }
 0x1f9   : > { %1734 = dma.done.wait (%p1396_p3), %s1099_s7, 2048  }
 0x1fa   : > { %1736 = vsyncadd (%p1396_p3), %s1099_s7, 4294965248  ;;  %s1108_s25 = scalar_lea.sflag [#allocation10], %s1098_s6 }
 0x1fb   : > { %1738 = dma.done.wait (%p1396_p3), %s1108_s25, 128  }
 0x1fc   : > { %1740 = vsyncadd (%p1396_p3), %s1108_s25, 4294967168  ;;  %s24_s17 = sadd.s32 1, %s1763_s17   ;;  %s2154_s12 = smov %s1747_s13 }
 0x1fd   : > { %p21_p5 = scmp.ge.s32.totalorder %s24_s17, 4   ;;  %s2155_s13 = smov %s1751_s14 }
 0x1fe   : > { %s2156_s14 = smov %s1893_s19  ;;  %s2157_s15 = smov %s1759_s16 }
 0x1ff   : > { %s2158_s16 = smov %s2160_s28  ;;  %23 = sbr.rel (!%p21_p5) target bundleno = 9 (0x9), region = 103 }
 0x204   :  { %1113 = vsyncpa [#allocation4], 1 }
 0x205   :  { %1115 = vsyncpa [#allocation4 + $0x1], 1 }
 0x206   :  { %1116 = vsyncpa [#allocation7], 1 }
 0x207   :  { %1117 = vsyncpa [#allocation5], 1 }
 0x208   :  { %1119 = vsyncpa [#allocation5 + $0x1], 1 }
 0x209   :  { %1120 = vsyncpa [#allocation10], 1 }
 0x20a   :  { %1122 = vsyncpa [#allocation10 + $0x1], 1 }

</bundles_post_ra>
